<compile_context>
chip_gen: v7x
topology: tpu7x:2x2x1
jax: 0.10.0
libtpu: 0.0.40
codegen_flags: <defaults>
</compile_context>

<pallas_src>
import jax
import jax.numpy as jnp
from jax.experimental import pallas as pl
from jax.experimental.pallas import tpu as pltpu

_LANES = 128


def gcn_kernel(adj_ref, x_ref, w_ref, b_ref, o_ref):
    bb, n, f_in = x_ref.shape
    f_out = w_ref.shape[1]

    adj = adj_ref[...]          # [bb, N, N]
    xb = x_ref[...]             # [bb, N, F_in]

    # support[b] = adj[b] @ x[b]   (batched MXU matmul, f32 accumulation)
    support = jnp.einsum("bij,bjf->bif", adj, xb,
                         preferred_element_type=jnp.float32)

    # Merge the weight matmul across the batch block: a single
    # [bb*N, F_in] x [F_in, F_out_pad] MXU pass instead of bb tiny ones.
    # (N is a multiple of 8 here, so the leading-dim collapse is tile-preserving.)
    support2d = support.reshape(bb * n, f_in).astype(w_ref.dtype)
    out = jnp.dot(support2d, w_ref[...], preferred_element_type=jnp.float32)
    out = out + b_ref[...].astype(jnp.float32)      # bias broadcast over rows

    # Lane-dense store: f_out is a multiple of 128 (padded in the wrapper).
    o_ref[...] = out.reshape(bb, n, f_out).astype(o_ref.dtype)


def _pick_block_b(batch, cap=8):
    """Largest divisor of `batch` that is <= cap (keeps VMEM bounded)."""
    for bb in range(min(batch, cap), 0, -1):
        if batch % bb == 0:
            return bb
    return 1


def graph_convolution(x, adj, weight, bias, *, block_b=None, compute_dtype=None):
    """x: [B, N, F_in], adj: [B, N, N], weight: [F_in, F_out], bias: [F_out]."""
    B, N, F_in = x.shape
    F_out = weight.shape[1]
    out_dtype = x.dtype

    # Optional bf16 operands (f32 accumulation stays) -- recommended on v6e/v7x.
    if compute_dtype is not None:
        x = x.astype(compute_dtype)
        adj = adj.astype(compute_dtype)
        weight = weight.astype(compute_dtype)

    # Pad F_out to a multiple of 128 so output stores are full-lane (unmasked).
    F_out_p = pl.cdiv(F_out, _LANES) * _LANES
    if F_out_p != F_out:
        weight = jnp.pad(weight, ((0, 0), (0, F_out_p - F_out)))
        bias = jnp.pad(bias, ((0, F_out_p - F_out),))
    bias2d = bias.reshape(1, F_out_p).astype(jnp.float32)

    if block_b is None:
        block_b = _pick_block_b(B)
    assert B % block_b == 0, "block_b must divide batch size"
    grid = (B // block_b,)

    in_itemsize = jnp.dtype(x.dtype).itemsize
    cost = pl.CostEstimate(
        flops=2 * B * N * N * F_in + 2 * B * N * F_in * F_out_p,
        transcendentals=0,
        bytes_accessed=(
            (adj.size + x.size + weight.size) * in_itemsize
            + bias2d.size * 4
            + B * N * F_out_p * jnp.dtype(out_dtype).itemsize
        ),
    )

    out = pl.pallas_call(
        gcn_kernel,
        out_shape=jax.ShapeDtypeStruct((B, N, F_out_p), out_dtype),
        grid_spec=pltpu.PrefetchScalarGridSpec(
            num_scalar_prefetch=0,
            grid=grid,
            in_specs=[
                pl.BlockSpec((block_b, N, N), lambda b: (b, 0, 0)),       # adj
                pl.BlockSpec((block_b, N, F_in), lambda b: (b, 0, 0)),    # x
                pl.BlockSpec((F_in, F_out_p), lambda b: (0, 0)),          # W
                pl.BlockSpec((1, F_out_p), lambda b: (0, 0)),             # bias
            ],
            out_specs=pl.BlockSpec((block_b, N, F_out_p), lambda b: (b, 0, 0)),
        ),
        compiler_params=pltpu.CompilerParams(
            dimension_semantics=("parallel",),
        ),
        cost_estimate=cost,
    )(adj, x, weight, bias2d)

    if F_out_p != F_out:
        out = out[..., :F_out]   # strip the lane padding in the wrapper
    return out


if __name__ == "__main__":
    # Shapes consistent with DCRNN: batch=2, channels(N)=16,
    # freq_bins(F_in)=32, hidden_size(F_out)=64.
    B, N, F_in, F_out = 2, 16, 32, 64

    key = jax.random.PRNGKey(0)
    kx, kadj, kw, kb = jax.random.split(key, 4)

    x = jax.random.normal(kx, (B, N, F_in), dtype=jnp.float32)
    adj = jax.random.normal(kadj, (B, N, N), dtype=jnp.float32)

    # Parameter init mirroring reset_parameters(): uniform(-stdv, stdv),
    # stdv = 1/sqrt(out_features).
    stdv = 1.0 / jnp.sqrt(jnp.float32(F_out))
    weight = jax.random.uniform(kw, (F_in, F_out), dtype=jnp.float32,
                                minval=-stdv, maxval=stdv)
    bias = jax.random.uniform(kb, (F_out,), dtype=jnp.float32,
                              minval=-stdv, maxval=stdv)

    # Reference: same math as the PyTorch forward.
    ref = jnp.einsum("bij,bjf->bif", adj, x) @ weight + bias

    # f32 path (default).
    out = graph_convolution(x, adj, weight, bias)
    out = jax.block_until_ready(out)
    assert out.shape == (B, N, F_out)
    assert jnp.allclose(out, ref, atol=1e-4, rtol=1e-4), "f32 kernel mismatch"

    # bf16 operand path (recommended on v6e / v7x), f32 accumulation.
    out_bf16 = graph_convolution(x, adj, weight, bias,
                                 compute_dtype=jnp.bfloat16)
    out_bf16 = jax.block_until_ready(out_bf16)
    assert jnp.allclose(out_bf16, ref, atol=1e-1, rtol=1e-1), "bf16 kernel mismatch"

    print("KERNEL_OK")
</pallas_src>

<mosaic_0001>
module attributes {stable_mosaic.version = 11 : i64} {
  func.func @gcn_kernel(%arg0: i32, %arg1: memref<2x16x16xf32, #tpu.memory_space<vmem>>, %arg2: memref<2x16x32xf32, #tpu.memory_space<vmem>>, %arg3: memref<32x128xf32, #tpu.memory_space<vmem>>, %arg4: memref<1x128xf32, #tpu.memory_space<vmem>>, %arg5: memref<2x16x128xf32, #tpu.memory_space<vmem>>) attributes {dimension_semantics = [#tpu.dimension_semantics<parallel>], iteration_bounds = array<i64: 1>, scalar_prefetch = 0 : i64, scratch_operands = 0 : i64, tpu.core_type = #tpu.core_type<tc>, window_params = [{transform_indices = @transform_0, window_bounds = array<i64: 2, 16, 16>}, {transform_indices = @transform_1, window_bounds = array<i64: 2, 16, 32>}, {pipeline_mode = #tpu.pipeline_mode<synchronous>, transform_indices = @transform_2, window_bounds = array<i64: 32, 128>}, {pipeline_mode = #tpu.pipeline_mode<synchronous>, transform_indices = @transform_3, window_bounds = array<i64: 1, 128>}, {transform_indices = @transform_4, window_bounds = array<i64: 2, 16, 128>}]} {
    %c0 = arith.constant 0 : index
    %c0_0 = arith.constant 0 : index
    %c0_1 = arith.constant 0 : index
    %0 = vector.load %arg1[%c0, %c0_0, %c0_1] : memref<2x16x16xf32, #tpu.memory_space<vmem>>, vector<2x16x16xf32>
    %c0_2 = arith.constant 0 : index
    %c0_3 = arith.constant 0 : index
    %c0_4 = arith.constant 0 : index
    %1 = vector.load %arg2[%c0_2, %c0_3, %c0_4] : memref<2x16x32xf32, #tpu.memory_space<vmem>>, vector<2x16x32xf32>
    "tpu.trace_start"() <{level = 10 : i32, message = "bij,bjf->bif"}> : () -> ()
    %cst = arith.constant dense<0.000000e+00> : vector<2x16x32xf32>
    %2 = tpu.matmul %0, %1, %cst {dimension_numbers = #tpu.dot_dimension_numbers<[2], [1], [1], [2], [0, 0, 0, 1, 1, 2], [0], [0]>} : vector<2x16x16xf32>, vector<2x16x32xf32>, vector<2x16x32xf32> -> vector<2x16x32xf32>
    "tpu.trace_stop"() : () -> ()
    %3 = vector.shape_cast %2 : vector<2x16x32xf32> to vector<32x32xf32>
    %c0_5 = arith.constant 0 : index
    %c0_6 = arith.constant 0 : index
    %4 = vector.load %arg3[%c0_5, %c0_6] : memref<32x128xf32, #tpu.memory_space<vmem>>, vector<32x128xf32>
    %cst_7 = arith.constant dense<0.000000e+00> : vector<32x128xf32>
    %5 = tpu.matmul %3, %4, %cst_7 {dimension_numbers = #tpu.dot_dimension_numbers<[1], [0], [0], [1], [0, 0, 1, 1], [], []>} : vector<32x32xf32>, vector<32x128xf32>, vector<32x128xf32> -> vector<32x128xf32>
    %c0_8 = arith.constant 0 : index
    %c0_9 = arith.constant 0 : index
    %6 = vector.load %arg4[%c0_8, %c0_9] : memref<1x128xf32, #tpu.memory_space<vmem>>, vector<1x128xf32>
    %7 = vector.broadcast %6 : vector<1x128xf32> to vector<32x128xf32>
    %8 = arith.addf %5, %7 : vector<32x128xf32>
    %9 = vector.shape_cast %8 : vector<32x128xf32> to vector<2x16x128xf32>
    %c0_10 = arith.constant 0 : index
    %c0_11 = arith.constant 0 : index
    %c0_12 = arith.constant 0 : index
    %10 = vector.load %arg5[%c0_10, %c0_11, %c0_12] : memref<2x16x128xf32, #tpu.memory_space<vmem>>, vector<2x16x128xf32>
    tpu.vector_store %arg5[%c0_10, %c0_11, %c0_12], %9 {strides = array<i32>} : memref<2x16x128xf32, #tpu.memory_space<vmem>>, vector<2x16x128xf32>,
    return
  }
  func.func @transform_0(%arg0: i32) -> (i32, i32, i32) {
    %c0_i32 = arith.constant 0 : i32
    %c0_i32_0 = arith.constant 0 : i32
    %c0_i32_1 = arith.constant 0 : i32
    return %arg0, %c0_i32, %c0_i32_0 : i32, i32, i32
  }
  func.func @transform_1(%arg0: i32) -> (i32, i32, i32) {
    %c0_i32 = arith.constant 0 : i32
    %c0_i32_0 = arith.constant 0 : i32
    %c0_i32_1 = arith.constant 0 : i32
    return %arg0, %c0_i32, %c0_i32_0 : i32, i32, i32
  }
  func.func @transform_2(%arg0: i32) -> (i32, i32) {
    %c0_i32 = arith.constant 0 : i32
    %c0_i32_0 = arith.constant 0 : i32
    %c0_i32_1 = arith.constant 0 : i32
    return %c0_i32, %c0_i32_0 : i32, i32
  }
  func.func @transform_3(%arg0: i32) -> (i32, i32) {
    %c0_i32 = arith.constant 0 : i32
    %c0_i32_0 = arith.constant 0 : i32
    %c0_i32_1 = arith.constant 0 : i32
    return %c0_i32, %c0_i32_0 : i32, i32
  }
  func.func @transform_4(%arg0: i32) -> (i32, i32, i32) {
    %c0_i32 = arith.constant 0 : i32
    %c0_i32_0 = arith.constant 0 : i32
    %c0_i32_1 = arith.constant 0 : i32
    return %arg0, %c0_i32, %c0_i32_0 : i32, i32, i32
  }
}

</mosaic_0001>

<bundles_post_ra>
// kernel: tpu_custom_call.1
= control target key start
LH: loop header
LB: loop body
LE: loop exit
PB: predicated region body
PF: predicated region fallthrough
CT: control target
= control target key end

     0   :  { %9 = vsyncpa [#allocation3], 0  ;;  %s635_s0 = inlined_call_operand.hbm [shape: f32[2,16,16], index: 0, kind: input, shape index: {}]   ;;  %s636_s1 = inlined_call_operand.hbm [shape: f32[2,16,32], index: 1, kind: input, shape index: {}]   ;;  %s637_s2 = inlined_call_operand.hbm [shape: f32[32,128], index: 2, kind: input, shape index: {}]   ;;  %s638_s3 = inlined_call_operand.vmem [shape: f32[1,128], index: 3, kind: input, shape index: {}]   ;;  %s639_s4 = inlined_call_operand.hbm [shape: f32[2,16,128], index: 4, kind: output, shape index: {}]  }
   0x1   :  { %10 = vsyncpa [#allocation6], 0 }
   0x2   :  { %11 = vsyncpa [#allocation4], 0  ;;  %s530_s15 = smov [#allocation5]   ;;  %s531_s17 = smov [#allocation2]  }
   0x3   :  { %s29_s16 = sshll.u32 %s530_s15, 4  ;;  %s17_s18 = sshll.u32 %s531_s17, 4  ;;  %s30_s16 = int_to_ptr.vmem [resolvable:$true] %s29_s16  ;;  %s561_s18 = int_to_ptr.vmem [resolvable:$true] %s17_s18 }
   0x4   :  { %s436_s21 = scalar_lea.hbm %s636_s1, 512 }
   0x5   :  { %p437_p0 = scmp.ne.s32.totalorder %s636_s1, %s436_s21  ;;  %p440_p1 = scmp.lt.u32.totalorder %s436_s21, %s636_s1 }
   0x7   :  { %p442_p2 = pnand %p440_p1, %p437_p0 }
   0x9   :  { %445 = shalt.err (!%p442_p2)
}
   0xa   :  { %s446_s26 = scalar_lea.vmem %s30_s16, 512  ;;  %p451_p4 = scmp.lt.s32.totalorder %s30_s16, %s30_s16 }
   0xb   :  { %p447_p3 = scmp.ne.s32.totalorder %s30_s16, %s446_s26  ;;  %p452_p5 = scmp.lt.s32.totalorder %s446_s26, %s446_s26 }
   0xd   :  { %p453_p6 = por %p452_p5, %p451_p4 }
   0xf   :  { %p454_p7 = pnand %p453_p6, %p447_p3 }
  0x11   :  { %457 = shalt.err (!%p454_p7)
}
  0x12   :  { %s532_s27 = smov 128   ;;  %s533_s28 = smov 8  }
  0x13   :  { %35 = dma.hbm_to_vmem [thread:$0]  %s636_s1, 512, %s30_s16, [#allocation6], %s532_s27, %s532_s27, %s533_s28  }
  0x14   :  { %s458_s7 = scalar_lea.hbm %s635_s0, 512 }
  0x15   :  { %p459_p8 = scmp.ne.s32.totalorder %s635_s0, %s458_s7  ;;  %p462_p9 = scmp.lt.u32.totalorder %s458_s7, %s635_s0 }
  0x17   :  { %p464_p10 = pnand %p462_p9, %p459_p8 }
  0x19   :  { %467 = shalt.err (!%p464_p10)
}
  0x1a   :  { %s468_s12 = scalar_lea.vmem %s561_s18, 512  ;;  %p473_p12 = scmp.lt.s32.totalorder %s561_s18, %s561_s18 }
  0x1b   :  { %p469_p11 = scmp.ne.s32.totalorder %s561_s18, %s468_s12  ;;  %p474_p13 = scmp.lt.s32.totalorder %s468_s12, %s468_s12 }
  0x1d   :  { %p475_p0 = por %p474_p13, %p473_p12 }
  0x1f   :  { %p476_p1 = pnand %p475_p0, %p469_p11 }
  0x21   :  { %479 = shalt.err (!%p476_p1)
}
  0x22   :  { %23 = dma.hbm_to_vmem [thread:$0]  %s635_s0, 512, %s561_s18, [#allocation3], %s532_s27, %s532_s27, %s533_s28  }
  0x23   :  { %s534_s14 = smov [#allocation7]   ;;  %s480_s19 = scalar_lea.hbm %s637_s2, 512 }
  0x24   :  { %s41_s15 = sshll.u32 %s534_s14, 4  ;;  %p481_p2 = scmp.ne.s32.totalorder %s637_s2, %s480_s19  ;;  %s42_s15 = int_to_ptr.vmem [resolvable:$true] %s41_s15 }
  0x25   :  { %p484_p3 = scmp.lt.u32.totalorder %s480_s19, %s637_s2 }
  0x27   :  { %p486_p4 = pnand %p484_p3, %p481_p2 }
  0x29   :  { %489 = shalt.err (!%p486_p4)
}
  0x2a   :  { %s490_s24 = scalar_lea.vmem %s42_s15, 512  ;;  %p495_p6 = scmp.lt.s32.totalorder %s42_s15, %s42_s15 }
  0x2b   :  { %p491_p5 = scmp.ne.s32.totalorder %s42_s15, %s490_s24  ;;  %p496_p7 = scmp.lt.s32.totalorder %s490_s24, %s490_s24 }
  0x2d   :  { %p497_p8 = por %p496_p7, %p495_p6 }
  0x2f   :  { %p498_p9 = pnand %p497_p8, %p491_p5 }
  0x31   :  { %501 = shalt.err (!%p498_p9)
}
  0x32   :  { %47 = dma.hbm_to_vmem [thread:$0]  %s637_s2, 512, %s42_s15, [#allocation6], %s532_s27, %s532_s27, %s533_s28  }
  0x33   :  { %524 = dma.done.wait [#allocation3], 512  }
  0x34   :  { %525 = vsyncadd [#allocation3], 4294966784 }
  0x35   :  { %526 = dma.done.wait [#allocation6], 1024  }
  0x36   :  { %527 = vsyncadd [#allocation6], 4294966272  ;;  %vm67_vm0 = vcmask 130048   ;;  %v63_v0 = vld [vmem:[#allocation5] sm:$0xff]  ;;  %v64_v1 = vld [vmem:[#allocation5 + $0x8] sm:$0xff]  ;;  %vm241_vm1 = vcmask 261120  }
  0x37   :  { %v59_v2 = vld [vmem:[#allocation2] sm:$0xff]  ;;  %v414_v3 = vpack.c.bf16 %v64_v1, %v63_v0  ;;  %v65_v4 = vld [vmem:[#allocation5 + $0x10] sm:$0xff]  ;;  %v66_v5 = vld [vmem:[#allocation5 + $0x18] sm:$0xff]  ;;  %s535_s26 = smov [#allocation8]  }
  0x38   :  { %390 = vmatprep.mubr.msk.f32.mxu1 %vm67_vm0, %v59_v2  ;;  %v418_v6 = vpack.c.bf16 %v66_v5, %v65_v4  ;;  %v230_v7 = vld [vmem:[#allocation7] sm:$0xff]  ;;  %v231_v8 = vld [vmem:[#allocation7 + $0x8] sm:$0xff]  ;;  %v232_v9 = vld [vmem:[#allocation7 + $0x10] sm:$0xff]  ;;  %s348_s29 = sshll.u32 %s535_s26, 4  ;;  %s349_s29 = int_to_ptr.vmem [resolvable:$true] %s348_s29 }
  0x39   :  { %415 = vmatprep.subr.bf16.mxu1 %v414_v3  ;;  %v233_v10 = vld [vmem:[#allocation7 + $0x18] sm:$0xff]  ;;  %v60_v11 = vld [vmem:[#allocation2 + $0x8] sm:$0xff]  ;;  %v422_v12 = vpack.c.bf16 %v231_v8, %v230_v7  ;;  %v61_v13 = vld [vmem:[#allocation2 + $0x10] sm:$0xff]  ;;  %s502_s30 = scalar_lea.vmem %s349_s29, 512  ;;  %p507_p11 = scmp.lt.s32.totalorder %s349_s29, %s349_s29 }
  0x3a   :  { %417 = vmatpush3.bf16.msra.mxu1 %v414_v3  ;;  %v426_v14 = vpack.c.bf16 %v233_v10, %v232_v9  ;;  %v62_v15 = vld [vmem:[#allocation2 + $0x18] sm:$0xff]  ;;  %v365_v20 = vld [vmem:[%s638_s3] ss:$0 sm:$0xff]  ;;  %p503_p10 = scmp.ne.s32.totalorder %s349_s29, %s502_s30  ;;  %p508_p12 = scmp.lt.s32.totalorder %s502_s30, %s502_s30 }
  0x3b   :  { %419 = vmatprep.subr.bf16.mxu1 %v418_v6  ;;  %423 = vmatprep.subr.bf16.mxu0 %v422_v12 }
  0x3c   :  { %425 = vmatpush3.bf16.msra.mxu0 %v422_v12  ;;  %p509_p13 = por %p508_p12, %p507_p11 }
  0x3d   :  { %391 = vmatmul.mubr.msk.f32.vlgmr.msra.gmra.mrb[0].mxu1 %vm67_vm0, %v60_v11  ;;  %427 = vmatprep.subr.bf16.mxu0 %v426_v14 }
  0x3e   :  { %421 = vmatpush3.bf16.msra.mxu1 %v418_v6  ;;  %397 = vmatprep.mubr.msk.f32.mxu1 %vm67_vm0, %v61_v13  ;;  %p510_p0 = pnand %p509_p13, %p503_p10 }
  0x40   :  { %429 = vmatpush3.bf16.msra.mxu0 %v426_v14 }
  0x41   :  { %398 = vmatmul.mubr.msk.f32.vlgmr.msra.gmra.mrb[2].mxu1 %vm67_vm0, %v62_v15 }
 0x110   :  { %v392_v16 = vpop.f32.mrb[0].mxu1 }
 0x111   :  { %v140_v17 = vpop.f32.mrb[1].mxu1 }
 0x112   :  { %408 = vmatprep.mubr.msk.f32.mxu0 %vm241_vm1, %v140_v17 }
 0x113   :  { %409 = vmatmul.mubr.msk.f32.vlgmr.msra.gmra.mrb[0].mxu0 %vm241_vm1, %v392_v16 }
 0x114   :  { %v399_v18 = vpop.f32.mrb[2].mxu1 }
 0x115   :  { %v221_v19 = vpop.f32.mrb[3].mxu1 }
 0x116   :  { %411 = vmatprep.mubr.msk.f32.mxu0 %vm241_vm1, %v221_v19 }
 0x117   :  { %412 = vmatmul.mubr.msk.f32.gmra.mrb[2].mxu0 %vm241_vm1, %v399_v18 }
 0x1e6   :  { %v410_v21 = vpop.f32.mrb[0].mxu0 }
 0x1e7   :  { %v326_v22 = vadd.f32 %v410_v21, %v365_v20  ;;  %v320_v23 = vpop.f32.mrb[1].mxu0 }
 0x1e8   :  { %v321_v24 = vadd.f32 %v365_v20, %v320_v23 }
 0x1e9   :  { %340 = vst [vmem:[#allocation8 + $0x8] sm:$0xff] %v326_v22 }
 0x1ea   :  { %339 = vst [vmem:[#allocation8] sm:$0xff] %v321_v24  ;;  %v413_v25 = vpop.f32.mrb[2].mxu0 }
 0x1eb   :  { %v336_v26 = vadd.f32 %v413_v25, %v365_v20  ;;  %v330_v27 = vpop.f32.mrb[3].mxu0 }
 0x1ec   :  { %v331_v28 = vadd.f32 %v365_v20, %v330_v27 }
 0x1ed   :  { %342 = vst [vmem:[#allocation8 + $0x18] sm:$0xff] %v336_v26 }
 0x1ee   :  { %341 = vst [vmem:[#allocation8 + $0x10] sm:$0xff] %v331_v28 }
 0x1ef   :  { %513 = shalt.err (!%p510_p0)
}
 0x1f0   :  { %s514_s6 = scalar_lea.hbm %s639_s4, 512 }
 0x1f1   :  { %p515_p1 = scmp.ne.s32.totalorder %s639_s4, %s514_s6  ;;  %p518_p2 = scmp.lt.u32.totalorder %s514_s6, %s639_s4 }
 0x1f3   :  { %p520_p3 = pnand %p518_p2, %p515_p1 }
 0x1f5   :  { %523 = shalt.err (!%p520_p3)
}
 0x1f6   :  { %354 = dma.vmem_to_hbm [thread:$0]  %s349_s29, 512, %s639_s4, [#allocation4], %s532_s27, %s532_s27, %s533_s28  }
 0x1f7   :  { %528 = dma.done.wait [#allocation4], 512  }
 0x1f8   :  { %529 = vsyncadd [#allocation4], 4294966784 }
 0x1f9   :  { %358 = vsyncpa [#allocation3], 1 }
 0x1fa   :  { %359 = vsyncpa [#allocation6], 1 }
 0x1fb   :  { %360 = vsyncpa [#allocation4], 1 }

</bundles_post_ra>
